<compile_context>
chip_gen: v6e
topology: v6e:2x2x1
jax: 0.10.0
libtpu: 0.0.40
codegen_flags: <defaults>
</compile_context>

<pallas_src>
import jax
import jax.numpy as jnp
from jax.experimental import pallas as pl
from jax.experimental.pallas import tpu as pltpu


# ----------------------------------------------------------------------------
# Pallas kernel: forward_inverse  (out = -shift)
# ----------------------------------------------------------------------------
def _negate_kernel(shift_ref, out_ref):
    # Single-vreg elementwise negate on the VPU.
    out_ref[...] = -shift_ref[...]


@jax.jit
def _negate_pallas(shift: jax.Array) -> jax.Array:
    # jit-cached: the pallas_call is lowered once per (shape, dtype) and then
    # dispatched as a compiled executable — removes per-call tracing and
    # host-side dispatch overhead, which dominated for this 56-byte array.
    n_bytes = shift.size * shift.dtype.itemsize
    return pl.pallas_call(
        _negate_kernel,
        out_shape=jax.ShapeDtypeStruct(shift.shape, shift.dtype),
        # Grid-less: the whole (tiny) array is one VMEM-resident block.
        in_specs=[pl.BlockSpec(memory_space=pltpu.MemorySpace.VMEM)],
        out_specs=pl.BlockSpec(memory_space=pltpu.MemorySpace.VMEM),
        # Advise XLA that this custom call is essentially free.
        cost_estimate=pl.CostEstimate(
            flops=shift.size, transcendentals=0, bytes_accessed=2 * n_bytes
        ),
    )(shift)
    # TODO(synk): if num_parameters ever reaches O(10^4+), store the parameter
    # lane-dense as (2, N) and tile with a 1-D grid + vmem_limit_bytes (v7x
    # has only 64 MiB physical VMEM); irrelevant at N = num_contours - 1.


# ----------------------------------------------------------------------------
# ContourModel in JAX
# ----------------------------------------------------------------------------
class ContourModel:
    def __init__(self, registration_type: str, num_contours: int, shift: bool = True):
        if num_contours <= 0:
            raise ValueError("num_contours must be positive")
        self.num_contours = num_contours
        if registration_type in ("analytical", "anchor_optimization"):
            self.num_parameters = self.num_contours - 1
        else:
            self.num_parameters = self.num_contours
        # nn.Parameter / buffer of torch.zeros(num_parameters, 2); the `shift`
        # flag only toggles trainability, not the forward math.
        self.shift = jnp.zeros((self.num_parameters, 2), dtype=jnp.float32)

    def reset_model(self):
        self.shift = jnp.zeros((self.num_parameters, 2), dtype=jnp.float32)

    def forward(self):
        # PyTorch forward() returns the parameter itself; identity needs no
        # kernel (a Pallas identity would be pure launch/DMA overhead).
        return self.shift

    def forward_inverse(self):
        # -1 * shift via the single jit-cached Pallas VPU kernel.
        return _negate_pallas(self.shift)


# ----------------------------------------------------------------------------
# Demo / self-check
# ----------------------------------------------------------------------------
if __name__ == "__main__":
    key = jax.random.PRNGKey(0)

    # Module-consistent small shape: num_contours=8, 'analytical' -> (7, 2).
    model = ContourModel(registration_type="analytical", num_contours=8, shift=True)

    # The module inits the parameter to zeros; install deterministic non-zero
    # values so the negation check is meaningful (as if trained).
    model.shift = jax.random.normal(key, (model.num_parameters, 2), dtype=jnp.float32)

    fwd = jax.block_until_ready(model.forward())
    inv = jax.block_until_ready(model.forward_inverse())

    # Second call exercises the cached (already-compiled) dispatch path.
    inv2 = jax.block_until_ready(model.forward_inverse())

    # Reference semantics: forward == shift, forward_inverse == -shift.
    assert fwd.shape == (model.num_parameters, 2)
    assert inv.shape == (model.num_parameters, 2)
    assert jnp.allclose(fwd, model.shift)
    assert jnp.allclose(inv, -1.0 * model.shift)
    assert jnp.allclose(inv2, inv)

    # Zero-initialized (reset) case, matching torch init exactly.
    model.reset_model()
    fwd0 = jax.block_until_ready(model.forward())
    inv0 = jax.block_until_ready(model.forward_inverse())
    assert jnp.allclose(fwd0, jnp.zeros((model.num_parameters, 2), jnp.float32))
    assert jnp.allclose(inv0, jnp.zeros((model.num_parameters, 2), jnp.float32))

    print("KERNEL_OK")
</pallas_src>

<mosaic_0001>
module attributes {stable_mosaic.version = 11 : i64} {
  func.func @_negate_kernel(%arg0: memref<7x2xf32, #tpu.memory_space<vmem>>, %arg1: memref<7x2xf32, #tpu.memory_space<vmem>>) attributes {dimension_semantics = [], scalar_prefetch = 0 : i64, scratch_operands = 0 : i64, tpu.core_type = #tpu.core_type<tc>} {
    %c0 = arith.constant 0 : index
    %c0_0 = arith.constant 0 : index
    %0 = vector.load %arg0[%c0, %c0_0] : memref<7x2xf32, #tpu.memory_space<vmem>>, vector<7x2xf32>
    %cst = arith.constant 0.000000e+00 : f32
    %1 = vector.broadcast %cst : f32 to vector<7x2xf32>
    %2 = arith.subf %1, %0 : vector<7x2xf32>
    %c0_1 = arith.constant 0 : index
    %c0_2 = arith.constant 0 : index
    %3 = vector.load %arg1[%c0_1, %c0_2] : memref<7x2xf32, #tpu.memory_space<vmem>>, vector<7x2xf32>
    tpu.vector_store %arg1[%c0_1, %c0_2], %2 {strides = array<i32>} : memref<7x2xf32, #tpu.memory_space<vmem>>, vector<7x2xf32>,
    return
  }
}

</mosaic_0001>

<bundles_post_ra>
// kernel: _negate_pallas.1
= control target key start
LH: loop header
LB: loop body
LE: loop exit
PB: predicated region body
PF: predicated region fallthrough
CT: control target
= control target key end

     0   :  { %vm10_vm0 = vcmask 14336   ;;  %s32_s0 = inlined_call_operand.vmem [shape: f32[7,2], index: 0, kind: input, shape index: {}]   ;;  %s33_s1 = inlined_call_operand.vmem [shape: f32[7,2], index: 1, kind: output, shape index: {}]  }
   0x1   :  { %v8_v0 = vld [vmem:[%s32_s0] sm:$0x7f] }
   0x2   :  { %v9_v1 = vsub.f32 0.0, %v8_v0 }
   0x4   :  { %11 = vst.msk [vmem:[%s33_s1] sm:$0x7f] %vm10_vm0, %v9_v1 }

</bundles_post_ra>
